<compile_context>
chip_gen: v7x
topology: tpu7x:2x2x1
jax: 0.10.0
libtpu: 0.0.40
codegen_flags: <defaults>
</compile_context>

<pallas_src>
import functools

import jax
import jax.numpy as jnp
from jax.experimental import pallas as pl
from jax.experimental.pallas import tpu as pltpu

LANES = 128
MAX_BLOCK_BYTES = 2 * 1024 * 1024   # 2 MiB / input block (4096 rows f32, 8192 rows bf16)


def _num_tensorcores():
    """Best-effort TensorCore-per-chip count (2 on v7x, else 1). Never raises."""
    try:
        info = pltpu.get_tpu_info()
        for name in ("num_cores", "core_count", "num_tensorcores", "tensorcore_count",
                     "cores_per_chip"):
            v = getattr(info, name, None)
            if isinstance(v, int) and v > 0:
                return v
    except Exception:
        pass
    try:
        kind = str(getattr(jax.devices()[0], "device_kind", "")).lower()
        if "v7" in kind:
            return 2
    except Exception:
        pass
    return 1


def _softplus_neg_ref(x):
    """Plain-JAX  sum-ready  -log(sigmoid(x))  (stable), used for the tiny tail / fallback."""
    return -jax.nn.log_sigmoid(x.astype(jnp.float32))


def _bpr_loss_kernel(r_ref, o_ref, acc_ref, *, rows, tile_rows, tiles_per_part, total_tiles):
    p = pl.program_id(0)          # parallel part (megacore-shardable)
    i = pl.program_id(1)          # sequential reduction over this part's row-tiles

    @pl.when(i == 0)
    def _init():
        acc_ref[...] = jnp.zeros_like(acc_ref)

    tile_idx = p * tiles_per_part + i

    def accumulate(x):
        # Numerically stable  -log(sigmoid(x)) == softplus(-x)
        z = -x
        loss = jnp.maximum(z, 0.0) + jnp.log(1.0 + jnp.exp(-jnp.abs(z)))
        # Fold to an (8,128) vreg-shaped partial with pure VPU adds; accumulator stays in VMEM.
        acc_ref[...] += loss.reshape(tile_rows // 8, 8, LANES).sum(axis=0)

    # Skip compute entirely on clamped overhang iterations of an imbalanced parallel split.
    @pl.when(tile_idx < total_tiles)
    def _compute():
        x = r_ref[...].astype(jnp.float32)                 # (tile_rows, LANES), f32 in-register
        valid_rows = rows - tile_idx * tile_rows           # scalar

        # Fast path: fully interior tile -> zero masking work.
        @pl.when(valid_rows >= tile_rows)
        def _full():
            accumulate(x)

        # Edge tile: cheap ROW-level mask only (out-of-bounds rows -> 1e9, softplus(-1e9)==0).
        @pl.when(valid_rows < tile_rows)
        def _edge():
            rid = jax.lax.broadcasted_iota(jnp.int32, x.shape, 0)
            accumulate(jnp.where(rid < valid_rows, x, jnp.float32(1e9)))

    @pl.when(i == pl.num_programs(1) - 1)
    def _finalize():
        # Single cross-lane/sublane reduce per part, once at the end.
        o_ref[...] = jnp.sum(acc_ref[...], axis=(0, 1), keepdims=True)


def single_pitf_loss(r, *, max_block_bytes=MAX_BLOCK_BYTES, num_parts=None):
    """Pallas TPU implementation of  sum(-log(sigmoid(r)))  for arbitrary-shaped r."""
    r_flat = jnp.ravel(r)                       # free reshape; native dtype on the wire
    n = int(r_flat.shape[0])
    if n == 0:
        return jnp.float32(0.0)

    itemsize = jnp.dtype(r_flat.dtype).itemsize
    pack = {8: 8, 4: 8, 2: 16, 1: 32}.get(itemsize, 8)   # sublane packing for this dtype

    tail = n % LANES
    main = n - tail
    rows = main // LANES

    # <128-element ragged tail: reduce with plain JAX (tiny) — no full-array pad copy.
    tail_loss = jnp.float32(0.0)
    if tail:
        tail_loss = jnp.sum(_softplus_neg_ref(jax.lax.slice(r_flat, (main,), (n,))))

    # Bodies smaller than one packed tile (< pack*128 elems): plain JAX, no kernel launch.
    if rows < pack:
        if rows:
            body = jax.lax.slice(r_flat, (0,), (main,))
            return jnp.sum(_softplus_neg_ref(body)) + tail_loss
        return tail_loss

    # Lane-dense (rows, 128) view.  Free bitcast when n % 128 == 0; for ragged n this prefix
    # slice is the only copy made (the old full-array jnp.pad is gone).
    body = r_flat if tail == 0 else jax.lax.slice(r_flat, (0,), (main,))
    r2d = body.reshape(rows, LANES)

    max_rows = max(pack, (max_block_bytes // (LANES * itemsize)) // pack * pack)
    tile_rows = min(max_rows, (rows // pack) * pack)      # packing-aligned, <= rows
    total_tiles = pl.cdiv(rows, tile_rows)

    if num_parts is None:
        num_parts = min(_num_tensorcores(), 2)            # 1 on v5e/v6e, 2 on v7x
    num_parts = max(1, min(int(num_parts), total_tiles))
    tiles_per_part = pl.cdiv(total_tiles, num_parts)

    # Clamp so an overhanging block index never addresses past the array; its compute is
    # skipped inside the kernel anyway.
    def in_map(pi, ii):
        return (jnp.minimum(pi * tiles_per_part + ii, total_tiles - 1), 0)

    kernel = functools.partial(
        _bpr_loss_kernel, rows=rows, tile_rows=tile_rows,
        tiles_per_part=tiles_per_part, total_tiles=total_tiles)

    partials = pl.pallas_call(
        kernel,
        out_shape=jax.ShapeDtypeStruct((num_parts, 1), jnp.float32),
        grid_spec=pltpu.PrefetchScalarGridSpec(
            num_scalar_prefetch=0,
            grid=(num_parts, tiles_per_part),
            in_specs=[pl.BlockSpec((tile_rows, LANES), in_map)],
            out_specs=pl.BlockSpec((1, 1), lambda pi, ii: (pi, 0)),
            scratch_shapes=[pltpu.VMEM((8, LANES), jnp.float32)],
        ),
        compiler_params=pltpu.CompilerParams(
            dimension_semantics=("parallel", "arbitrary"),
            vmem_limit_bytes=32 * 1024 * 1024,
        ),
        cost_estimate=pl.CostEstimate(
            flops=6 * main,
            transcendentals=2 * main,
            bytes_accessed=main * itemsize + 8 * num_parts),
    )(r2d)

    return jnp.sum(partials) + tail_loss


if __name__ == "__main__":
    key = jax.random.PRNGKey(0)
    k1, k2, k3, k4, k5 = jax.random.split(key, 5)

    def ref_loss(x):
        return jnp.sum(-jax.nn.log_sigmoid(x.astype(jnp.float32)))

    # 1) lane-aligned f32, single big tile, unmasked fast path only
    r1 = jax.random.normal(k1, (4096,), dtype=jnp.float32)
    out1 = jax.block_until_ready(single_pitf_loss(r1))
    assert jnp.allclose(out1, ref_loss(r1), rtol=1e-5, atol=1e-2), (out1, ref_loss(r1))

    # 2) ragged length + large magnitudes: wrapper tail path, in-kernel edge row-mask,
    #    numerically stable softplus (naive -log(sigmoid) would overflow to inf)
    r2 = 30.0 * jax.random.normal(k2, (5000,), dtype=jnp.float32)
    out2 = jax.block_until_ready(single_pitf_loss(r2))
    assert jnp.allclose(out2, ref_loss(r2), rtol=1e-5, atol=1e-2), (out2, ref_loss(r2))

    # 3) multi-tile grid, forced 2-way parallel split with a clamped/skipped overhang step
    r3 = jax.random.normal(k3, (72, 128), dtype=jnp.float32)
    out3 = jax.block_until_ready(
        single_pitf_loss(r3, max_block_bytes=8 * 128 * 4, num_parts=2))
    assert jnp.allclose(out3, ref_loss(r3), rtol=1e-5, atol=1e-2), (out3, ref_loss(r3))

    # 4) bfloat16 input: exercises dtype-packing-aware tile_rows (multiple of 16)
    r4 = jax.random.normal(k4, (2048,), dtype=jnp.bfloat16)
    out4 = jax.block_until_ready(single_pitf_loss(r4))
    assert jnp.allclose(out4, ref_loss(r4), rtol=1e-4, atol=1e-2), (out4, ref_loss(r4))

    # 5) tiny input: plain-JAX fallback (body smaller than one packed tile)
    r5 = jax.random.normal(k5, (1000,), dtype=jnp.float32)
    out5 = jax.block_until_ready(single_pitf_loss(r5))
    assert jnp.allclose(out5, ref_loss(r5), rtol=1e-5, atol=1e-2), (out5, ref_loss(r5))

    print("KERNEL_OK")
</pallas_src>

<mosaic_0001>
module attributes {stable_mosaic.version = 11 : i64} {
  func.func @_bpr_loss_kernel(%arg0: i32, %arg1: i32, %arg2: memref<32x128xf32, #tpu.memory_space<vmem>>, %arg3: memref<1x1xf32, #tpu.memory_space<vmem>>, %arg4: memref<8x128xf32, #tpu.memory_space<vmem>>) attributes {dimension_semantics = [#tpu.dimension_semantics<parallel>, #tpu.dimension_semantics<arbitrary>], iteration_bounds = array<i64: 1, 1>, scalar_prefetch = 0 : i64, scratch_operands = 1 : i64, tpu.core_type = #tpu.core_type<tc>, window_params = [{transform_indices = @transform_0, window_bounds = array<i64: 32, 128>}, {transform_indices = @transform_1, window_bounds = array<i64: 1, 1>}]} {
    %c0_i32 = arith.constant 0 : i32
    %0 = arith.cmpi eq, %arg1, %c0_i32 : i32
    %1 = arith.extui %0 : i1 to i32
    %c0_i32_0 = arith.constant 0 : i32
    %2 = arith.cmpi ne, %1, %c0_i32_0 : i32
    scf.if %2 {
      %cst = arith.constant 0.000000e+00 : f32
      %11 = vector.broadcast %cst : f32 to vector<8x128xf32>
      %c0 = arith.constant 0 : index
      %c0_5 = arith.constant 0 : index
      %12 = vector.load %arg4[%c0, %c0_5] : memref<8x128xf32, #tpu.memory_space<vmem>>, vector<8x128xf32>
      tpu.vector_store %arg4[%c0, %c0_5], %11 {strides = array<i32>} : memref<8x128xf32, #tpu.memory_space<vmem>>, vector<8x128xf32>,
    } else {
    }
    %c1_i32 = arith.constant 1 : i32
    %3 = arith.muli %arg0, %c1_i32 : i32
    %4 = arith.addi %3, %arg1 : i32
    %c1_i32_1 = arith.constant 1 : i32
    %5 = arith.cmpi slt, %4, %c1_i32_1 : i32
    %6 = arith.extui %5 : i1 to i32
    %c0_i32_2 = arith.constant 0 : i32
    %7 = arith.cmpi ne, %6, %c0_i32_2 : i32
    scf.if %7 {
      %c0 = arith.constant 0 : index
      %c0_5 = arith.constant 0 : index
      %11 = vector.load %arg2[%c0, %c0_5] : memref<32x128xf32, #tpu.memory_space<vmem>>, vector<32x128xf32>
      %c32_i32 = arith.constant 32 : i32
      %12 = arith.muli %4, %c32_i32 : i32
      %c32_i32_6 = arith.constant 32 : i32
      %13 = arith.subi %c32_i32_6, %12 : i32
      %c32_i32_7 = arith.constant 32 : i32
      %14 = arith.cmpi sge, %13, %c32_i32_7 : i32
      %15 = arith.extui %14 : i1 to i32
      %c0_i32_8 = arith.constant 0 : i32
      %16 = arith.cmpi ne, %15, %c0_i32_8 : i32
      scf.if %16 {
        %cst = arith.constant 0.000000e+00 : f32
        %20 = vector.broadcast %cst : f32 to vector<32x128xf32>
        %21 = arith.subf %20, %11 : vector<32x128xf32>
        %cst_11 = arith.constant 0.000000e+00 : f32
        %22 = vector.broadcast %cst_11 : f32 to vector<32x128xf32>
        %23 = arith.maximumf %21, %22 : vector<32x128xf32>
        %24 = math.absf %21 : vector<32x128xf32>
        %cst_12 = arith.constant 0.000000e+00 : f32
        %25 = vector.broadcast %cst_12 : f32 to vector<32x128xf32>
        %26 = arith.subf %25, %24 : vector<32x128xf32>
        %27 = math.exp %26 : vector<32x128xf32>
        %cst_13 = arith.constant 1.000000e+00 : f32
        %28 = vector.broadcast %cst_13 : f32 to vector<32x128xf32>
        %29 = arith.addf %28, %27 : vector<32x128xf32>
        %30 = math.log %29 : vector<32x128xf32>
        %31 = arith.addf %23, %30 : vector<32x128xf32>
        %c0_14 = arith.constant 0 : index
        %c0_15 = arith.constant 0 : index
        %32 = vector.load %arg4[%c0_14, %c0_15] : memref<8x128xf32, #tpu.memory_space<vmem>>, vector<8x128xf32>
        %33 = vector.shape_cast %31 : vector<32x128xf32> to vector<4x8x128xf32>
        %cst_16 = arith.constant dense<0.000000e+00> : vector<8x128xf32>
        %34 = vector.multi_reduction <add>, %33, %cst_16 [0] : vector<4x8x128xf32> to vector<8x128xf32>
        %35 = arith.addf %32, %34 : vector<8x128xf32>
        %c0_17 = arith.constant 0 : index
        %c0_18 = arith.constant 0 : index
        %36 = vector.load %arg4[%c0_17, %c0_18] : memref<8x128xf32, #tpu.memory_space<vmem>>, vector<8x128xf32>
        tpu.vector_store %arg4[%c0_17, %c0_18], %35 {strides = array<i32>} : memref<8x128xf32, #tpu.memory_space<vmem>>, vector<8x128xf32>,
      } else {
      }
      %c32_i32_9 = arith.constant 32 : i32
      %17 = arith.cmpi slt, %13, %c32_i32_9 : i32
      %18 = arith.extui %17 : i1 to i32
      %c0_i32_10 = arith.constant 0 : i32
      %19 = arith.cmpi ne, %18, %c0_i32_10 : i32
      scf.if %19 {
        %20 = tpu.iota {dimensions = array<i32: 0>} : vector<32x128xi32>
        %21 = vector.broadcast %13 : i32 to vector<32x128xi32>
        %22 = arith.cmpi slt, %20, %21 : vector<32x128xi32>
        %cst = arith.constant 1.000000e+09 : f32
        %23 = vector.broadcast %cst : f32 to vector<32x128xf32>
        %24 = arith.select %22, %11, %23 : vector<32x128xi1>, vector<32x128xf32>
        %cst_11 = arith.constant 0.000000e+00 : f32
        %25 = vector.broadcast %cst_11 : f32 to vector<32x128xf32>
        %26 = arith.subf %25, %24 : vector<32x128xf32>
        %cst_12 = arith.constant 0.000000e+00 : f32
        %27 = vector.broadcast %cst_12 : f32 to vector<32x128xf32>
        %28 = arith.maximumf %26, %27 : vector<32x128xf32>
        %29 = math.absf %26 : vector<32x128xf32>
        %cst_13 = arith.constant 0.000000e+00 : f32
        %30 = vector.broadcast %cst_13 : f32 to vector<32x128xf32>
        %31 = arith.subf %30, %29 : vector<32x128xf32>
        %32 = math.exp %31 : vector<32x128xf32>
        %cst_14 = arith.constant 1.000000e+00 : f32
        %33 = vector.broadcast %cst_14 : f32 to vector<32x128xf32>
        %34 = arith.addf %33, %32 : vector<32x128xf32>
        %35 = math.log %34 : vector<32x128xf32>
        %36 = arith.addf %28, %35 : vector<32x128xf32>
        %c0_15 = arith.constant 0 : index
        %c0_16 = arith.constant 0 : index
        %37 = vector.load %arg4[%c0_15, %c0_16] : memref<8x128xf32, #tpu.memory_space<vmem>>, vector<8x128xf32>
        %38 = vector.shape_cast %36 : vector<32x128xf32> to vector<4x8x128xf32>
        %cst_17 = arith.constant dense<0.000000e+00> : vector<8x128xf32>
        %39 = vector.multi_reduction <add>, %38, %cst_17 [0] : vector<4x8x128xf32> to vector<8x128xf32>
        %40 = arith.addf %37, %39 : vector<8x128xf32>
        %c0_18 = arith.constant 0 : index
        %c0_19 = arith.constant 0 : index
        %41 = vector.load %arg4[%c0_18, %c0_19] : memref<8x128xf32, #tpu.memory_space<vmem>>, vector<8x128xf32>
        tpu.vector_store %arg4[%c0_18, %c0_19], %40 {strides = array<i32>} : memref<8x128xf32, #tpu.memory_space<vmem>>, vector<8x128xf32>,
      } else {
      }
    } else {
    }
    %c0_i32_3 = arith.constant 0 : i32
    %8 = arith.cmpi eq, %arg1, %c0_i32_3 : i32
    %9 = arith.extui %8 : i1 to i32
    %c0_i32_4 = arith.constant 0 : i32
    %10 = arith.cmpi ne, %9, %c0_i32_4 : i32
    scf.if %10 {
      %c0 = arith.constant 0 : index
      %c0_5 = arith.constant 0 : index
      %11 = vector.load %arg4[%c0, %c0_5] : memref<8x128xf32, #tpu.memory_space<vmem>>, vector<8x128xf32>
      %12 = vector.shape_cast %11 : vector<8x128xf32> to vector<1x8x128xf32>
      %cst = arith.constant dense<0.000000e+00> : vector<1xf32>
      %13 = vector.multi_reduction <add>, %12, %cst [1, 2] : vector<1x8x128xf32> to vector<1xf32>
      %14 = vector.shape_cast %13 : vector<1xf32> to vector<1x1x1xf32>
      %15 = vector.extract %14[0, 0, 0] : f32 from vector<1x1x1xf32>
      %16 = vector.broadcast %15 : f32 to vector<1x1xf32>
      %c0_6 = arith.constant 0 : index
      %c0_7 = arith.constant 0 : index
      %17 = vector.load %arg3[%c0_6, %c0_7] : memref<1x1xf32, #tpu.memory_space<vmem>>, vector<1x1xf32>
      tpu.vector_store %arg3[%c0_6, %c0_7], %16 {strides = array<i32>} : memref<1x1xf32, #tpu.memory_space<vmem>>, vector<1x1xf32>,
    } else {
    }
    return
  }
  func.func @transform_0(%arg0: i32, %arg1: i32) -> (i32, i32) {
    %c1_i32 = arith.constant 1 : i32
    %0 = arith.muli %arg0, %c1_i32 : i32
    %1 = arith.addi %0, %arg1 : i32
    %c0_i32 = arith.constant 0 : i32
    %2 = arith.minsi %1, %c0_i32 : i32
    %c0_i32_0 = arith.constant 0 : i32
    %c0_i32_1 = arith.constant 0 : i32
    return %2, %c0_i32_0 : i32, i32
  }
  func.func @transform_1(%arg0: i32, %arg1: i32) -> (i32, i32) {
    %c0_i32 = arith.constant 0 : i32
    %c0_i32_0 = arith.constant 0 : i32
    return %arg0, %c0_i32 : i32, i32
  }
}

</mosaic_0001>

<bundles_post_ra>
// kernel: tpu_custom_call.1
= control target key start
LH: loop header
LB: loop body
LE: loop exit
PB: predicated region body
PF: predicated region fallthrough
CT: control target
= control target key end

     0   :  { %6 = vsyncpa [#allocation4], 0  ;;  %s304_s0 = inlined_call_operand.hbm [shape: f32[32,128], index: 0, kind: input, shape index: {}]   ;;  %s305_s1 = inlined_call_operand.hbm [shape: f32[1,1], index: 1, kind: output, shape index: {}]  }
   0x1   :  { %7 = vsyncpa [#allocation5], 0  ;;  %s266_s6 = smov [#allocation3]   ;;  %s218_s10 = scalar_lea.hbm %s304_s0, 512 }
   0x2   :  { %s19_s7 = sshll.u32 %s266_s6, 4  ;;  %p219_p0 = scmp.ne.s32.totalorder %s304_s0, %s218_s10  ;;  %s20_s7 = int_to_ptr.vmem [resolvable:$true] %s19_s7 }
   0x3   :  { %p222_p1 = scmp.lt.u32.totalorder %s218_s10, %s304_s0 }
   0x5   :  { %p224_p2 = pnand %p222_p1, %p219_p0 }
   0x7   :  { %227 = shalt.err (!%p224_p2)
}
   0x8   :  { %s228_s15 = scalar_lea.vmem %s20_s7, 512  ;;  %p233_p4 = scmp.lt.s32.totalorder %s20_s7, %s20_s7 }
   0x9   :  { %p229_p3 = scmp.ne.s32.totalorder %s20_s7, %s228_s15  ;;  %p234_p5 = scmp.lt.s32.totalorder %s228_s15, %s228_s15 }
   0xb   :  { %p235_p6 = por %p234_p5, %p233_p4 }
   0xd   :  { %p236_p7 = pnand %p235_p6, %p229_p3 }
   0xf   :  { %239 = shalt.err (!%p236_p7)
}
  0x10   :  { %s267_s16 = smov 128   ;;  %s268_s17 = smov 8  }
  0x11   :  { %25 = dma.hbm_to_vmem [thread:$0]  %s304_s0, 512, %s20_s7, [#allocation4], %s267_s16, %s267_s16, %s268_s17  }
  0x12   :  { %262 = dma.done.wait [#allocation4], 512  }
  0x13   :  { %263 = vsyncadd [#allocation4], 4294966784  ;;  %v43_v0 = vld [vmem:[#allocation3] sm:$0xff]  ;;  %v44_v1 = vld [vmem:[#allocation3 + $0x8] sm:$0xff]  ;;  %s269_s0 = smov [#allocation6]   ;;  %vm177_vm0 = vcmask 0  }
  0x14   :  { %v45_v2 = vld [vmem:[#allocation3 + $0x10] sm:$0xff]  ;;  %v46_v3 = vld [vmem:[#allocation3 + $0x18] sm:$0xff]  ;;  %v53_v4 = vsub.f32 0.0, %v43_v0  ;;  %v54_v5 = vsub.f32 0.0, %v44_v1  ;;  %s185_s20 = sshll.u32 %s269_s0, 4  ;;  %s186_s20 = int_to_ptr.vmem [resolvable:$true] %s185_s20 }
  0x15   :  { %v55_v6 = vsub.f32 0.0, %v45_v2  ;;  %v56_v7 = vsub.f32 0.0, %v46_v3  ;;  %s240_s22 = scalar_lea.vmem %s186_s20, 16  ;;  %s244_s23 = scalar_lea.vmem %s186_s20, 32 }
  0x16   :  { %v61_v8 = vand.u32 2147483647, %v53_v4  ;;  %v62_v9 = vand.u32 2147483647, %v54_v5  ;;  %v57_v28 = vmax.f32 %v53_v4, 0.0  ;;  %v58_v30 = vmax.f32 %v54_v5, 0.0  ;;  %p241_p8 = scmp.ne.s32.totalorder %s186_s20, %s240_s22  ;;  %p245_p9 = scmp.lt.s32.totalorder %s186_s20, %s186_s20 }
  0x17   :  { %v63_v10 = vand.u32 2147483647, %v55_v6  ;;  %v64_v11 = vand.u32 2147483647, %v56_v7  ;;  %v59_v32 = vmax.f32 %v55_v6, 0.0  ;;  %v60_v35 = vmax.f32 %v56_v7, 0.0  ;;  %p246_p10 = scmp.lt.s32.totalorder %s244_s23, %s240_s22 }
  0x18   :  { %v65_v12 = vsub.f32 0.0, %v61_v8  ;;  %v66_v13 = vsub.f32 0.0, %v62_v9 }
  0x19   :  { %v67_v14 = vsub.f32 0.0, %v63_v10  ;;  %v68_v15 = vsub.f32 0.0, %v64_v11  ;;  %p247_p11 = por %p246_p10, %p245_p9 }
  0x1a   :  { %v69_v16 = vmul.f32 1.442695, %v65_v12  ;;  %v71_v17 = vmul.f32 1.442695, %v66_v13 }
  0x1b   :  { %v73_v18 = vmul.f32 1.442695, %v67_v14  ;;  %v75_v19 = vmul.f32 1.442695, %v68_v15  ;;  %p248_p12 = pnand %p247_p11, %p241_p8 }
  0x1c   :  { %202 = vpow2.f32 %v69_v16 }
  0x1d   :  { %204 = vpow2.f32 %v71_v17 }
  0x1e   :  { %206 = vpow2.f32 %v73_v18 }
  0x1f   :  { %208 = vpow2.f32 %v75_v19 }
  0x26   :  { %v203_v20 = vpop.eup %202 }
  0x27   :  { %v205_v21 = vpop.eup %204  ;;  %v77_v22 = vadd.f32 1.0, %v203_v20 }
  0x28   :  { %v207_v23 = vpop.eup %206  ;;  %v78_v24 = vadd.f32 1.0, %v205_v21 }
  0x29   :  { %v209_v25 = vpop.eup %208  ;;  %v79_v26 = vadd.f32 1.0, %v207_v23  ;;  %210 = vlog2.f32 %v77_v22 }
  0x2a   :  { %v80_v27 = vadd.f32 1.0, %v209_v25  ;;  %212 = vlog2.f32 %v78_v24 }
  0x2b   :  { %214 = vlog2.f32 %v79_v26 }
  0x2c   :  { %216 = vlog2.f32 %v80_v27 }
  0x33   :  { %v211_v29 = vpop.eup %210 }
  0x34   :  { %v213_v31 = vpop.eup %212  ;;  %v82_v33 = vmul.f32 0.6931472, %v211_v29 }
  0x35   :  { %v215_v34 = vpop.eup %214  ;;  %v84_v36 = vmul.f32 0.6931472, %v213_v31 }
  0x36   :  { %v217_v37 = vpop.eup %216  ;;  %v86_v38 = vmul.f32 0.6931472, %v215_v34  ;;  %v89_v39 = vadd.f32 %v82_v33, %v57_v28 }
  0x37   :  { %v88_v40 = vmul.f32 0.6931472, %v217_v37  ;;  %v90_v41 = vadd.f32 %v84_v36, %v58_v30 }
  0x38   :  { %v91_v42 = vadd.f32 %v86_v38, %v59_v32 }
  0x39   :  { %v92_v43 = vadd.f32 %v88_v40, %v60_v35  ;;  %v94_v44 = vadd.f32 %v90_v41, %v89_v39 }
  0x3b   :  { %v95_v45 = vadd.f32 %v94_v44, %v91_v42 }
  0x3d   :  { %v96_v46 = vadd.f32 %v95_v45, %v92_v43 }
  0x3f   :  { %167 = vadd.xlane.f32.xlu0 %v96_v46 }
  0xcc   :  { %v168_v47 = vpop.xlane.xlu0 %167 }
  0xcd   :  { %v169_v48 = vrot.slane %v168_v47, 4 }
  0xcf   :  { %v170_v49 = vadd.f32 %v169_v48, %v168_v47 }
  0xd1   :  { %v171_v50 = vrot.slane %v170_v49, 2 }
  0xd3   :  { %v172_v51 = vadd.f32 %v171_v50, %v170_v49 }
  0xd5   :  { %v173_v52 = vrot.slane %v172_v51, 1 }
  0xd7   :  { %v174_v53 = vadd.f32 %v173_v52, %v172_v51 }
  0xd9   :  { %196 = vpush %v174_v53 }
 0x10a   :  { %s197_s21 = spop %196 }
 0x10b   :  { %v176_v54 = vstv %s197_s21 }
 0x10c   :  { %178 = vst.msk [vmem:[#allocation6] sm:$0x1] %vm177_vm0, %v176_v54 }
 0x10d   :  { %251 = shalt.err (!%p248_p12)
}
 0x10e   :  { %s252_s26 = scalar_lea.hbm %s305_s1, 16 }
 0x10f   :  { %p253_p13 = scmp.ne.s32.totalorder %s305_s1, %s252_s26  ;;  %p256_p0 = scmp.lt.u32.totalorder %s252_s26, %s305_s1 }
 0x111   :  { %p258_p1 = pnand %p256_p0, %p253_p13 }
 0x113   :  { %261 = shalt.err (!%p258_p1)
}
 0x114   :  { %188 = dma.vmem_to_hbm [thread:$0]  %s186_s20, 16, %s305_s1, [#allocation5]  }
 0x115   :  { %264 = dma.done.wait [#allocation5], 16  }
 0x116   :  { %265 = vsyncadd [#allocation5], 4294967280 }
 0x117   :  { %192 = vsyncpa [#allocation4], 1 }
 0x118   :  { %193 = vsyncpa [#allocation5], 1 }

</bundles_post_ra>
